<compile_context>
chip_gen: v7x
topology: tpu7x:2x2x1
jax: 0.10.0
libtpu: 0.0.40
codegen_flags: <defaults>
</compile_context>

<pallas_src>
import jax
import jax.numpy as jnp
from jax import lax
from jax.experimental import pallas as pl
from jax.experimental.pallas import tpu as pltpu


# ---------------------------------------------------------------------------
# Single-pass kernel: one (BT, C, HW) block per grid step (whole images in VMEM).
# ---------------------------------------------------------------------------
def _msca_fused_kernel(x_ref, o_ref):
    x = x_ref[...].astype(jnp.float32)                  # (BT, C, HW)
    _, C, HW = x.shape
    third = jnp.float32(1.0 / 3.0)
    # Matches the PyTorch reference exactly: C==1 / HW==1 give inf/nan there too.
    inv_cm1 = jnp.float32(1.0) / jnp.float32(C - 1)
    inv_hw1 = jnp.float32(1.0) / jnp.float32(HW - 1)

    # ---------------- channel branch ----------------
    p_min = jnp.min(x, axis=2, keepdims=True)           # (BT, C, 1)
    p_avg = jnp.mean(x, axis=2, keepdims=True)
    p_max = jnp.max(x, axis=2, keepdims=True)
    m_min = p_min - jnp.mean(p_min, axis=1, keepdims=True)
    m_avg = p_avg - jnp.mean(p_avg, axis=1, keepdims=True)
    m_max = p_max - jnp.mean(p_max, axis=1, keepdims=True)
    t_ch = m_min + m_avg + m_max
    # Column sums of the 3x3 channel covariance (torch sum(cov_mix, dim=1)) via
    # the identity w_j = sum_c m_j[c] * (sum_k m_k[c]) / (C-1): no (C,3) concat,
    # no MXU 3x3 matmul, no transpose.
    w0 = jnp.sum(m_min * t_ch, axis=1, keepdims=True) * inv_cm1    # (BT,1,1)
    w1 = jnp.sum(m_avg * t_ch, axis=1, keepdims=True) * inv_cm1
    w2 = jnp.sum(m_max * t_ch, axis=1, keepdims=True) * inv_cm1
    mix = (p_min * w0 + p_avg * w1 + p_max * w2) * third            # (BT, C, 1)

    # ---------------- spatial branch ----------------
    s_min = jnp.min(x, axis=1, keepdims=True)            # (BT, 1, HW)
    s_avg = jnp.mean(x, axis=1, keepdims=True)
    s_max = jnp.max(x, axis=1, keepdims=True)
    c_min = s_min - jnp.mean(s_min, axis=2, keepdims=True)
    c_avg = s_avg - jnp.mean(s_avg, axis=2, keepdims=True)
    c_max = s_max - jnp.mean(s_max, axis=2, keepdims=True)
    t_sp = c_min + c_avg + c_max
    # Row sums of the 3x3 spatial covariance (torch sum(cov_smix, dim=2)).
    v0 = jnp.sum(c_min * t_sp, axis=2, keepdims=True) * inv_hw1     # (BT,1,1)
    v1 = jnp.sum(c_avg * t_sp, axis=2, keepdims=True) * inv_hw1
    v2 = jnp.sum(c_max * t_sp, axis=2, keepdims=True) * inv_hw1
    smix = (s_min * v0 + s_avg * v1 + s_max * v2) * third            # (BT, 1, HW)

    # TODO(synk): on v7x the six reductions + residual add could be fused into a
    # single manual pass over the tile to cut VMEM traversals from ~7x to ~2x.
    o_ref[...] = (x + mix + smix).astype(o_ref.dtype)


def _msca_single_pass(xf, bt, vmem_limit_bytes):
    B, C, HW = xf.shape
    return pl.pallas_call(
        _msca_fused_kernel,
        out_shape=jax.ShapeDtypeStruct((B, C, HW), xf.dtype),
        grid_spec=pltpu.PrefetchScalarGridSpec(
            num_scalar_prefetch=0,
            grid=(B // bt,),
            in_specs=[pl.BlockSpec((bt, C, HW), lambda b: (b, 0, 0))],
            out_specs=pl.BlockSpec((bt, C, HW), lambda b: (b, 0, 0)),
        ),
        input_output_aliases={0: 0},     # out has x's shape/dtype -> reuse buffer
        compiler_params=pltpu.CompilerParams(
            dimension_semantics=("parallel",),
            vmem_limit_bytes=vmem_limit_bytes),
    )(xf)


# ---------------------------------------------------------------------------
# HW-tiled two-pass streaming path (for activations that do not fit VMEM).
# ---------------------------------------------------------------------------
_MOM_ROWS = 8    # rows 0..2: sum_p s_i ; rows 3..5: sum_p s_i*(s_min+s_avg+s_max)


def _msca_two_pass(xf, hw_tile, itemsize, vmem_budget, vmem_limit_bytes):
    B, C, HW = xf.shape
    if hw_tile is None:
        per_elem = 4 * itemsize + 12
        hw_tile = (vmem_budget // (C * per_elem)) // 128 * 128
        hw_tile = max(128, min(4096, int(hw_tile)))
    T = int(hw_tile)
    assert T % 128 == 0, T
    nT = pl.cdiv(HW, T)

    # ---- pass 1: streaming reductions over HW tiles (accumulators = outputs) ----
    def stats_kernel(x_ref, cmin_ref, csum_ref, cmax_ref, mom_ref):
        t = pl.program_id(1)
        x = x_ref[...].astype(jnp.float32)                      # (1, C, T)
        tl = x.shape[2]
        lane = lax.broadcasted_iota(jnp.int32, (1, 1, tl), 2)
        valid = (t * tl + lane) < HW                            # mask padded lanes

        @pl.when(t == 0)
        def _():
            cmin_ref[...] = jnp.full(cmin_ref.shape, jnp.inf, cmin_ref.dtype)
            cmax_ref[...] = jnp.full(cmax_ref.shape, -jnp.inf, cmax_ref.dtype)
            csum_ref[...] = jnp.zeros(csum_ref.shape, csum_ref.dtype)
            mom_ref[...] = jnp.zeros(mom_ref.shape, mom_ref.dtype)

        # channel branch: running min / sum / max over spatial.
        cmin_ref[...] = jnp.minimum(
            cmin_ref[...],
            jnp.min(jnp.where(valid, x, jnp.inf), axis=2, keepdims=True))
        cmax_ref[...] = jnp.maximum(
            cmax_ref[...],
            jnp.max(jnp.where(valid, x, -jnp.inf), axis=2, keepdims=True))
        csum_ref[...] = csum_ref[...] + jnp.sum(
            jnp.where(valid, x, 0.0), axis=2, keepdims=True)

        # spatial branch: per-pixel stats + raw moments as lane-partial sums.
        s_min = jnp.min(x, axis=1, keepdims=True)               # (1, 1, T)
        s_avg = jnp.mean(x, axis=1, keepdims=True)
        s_max = jnp.max(x, axis=1, keepdims=True)
        s_tot = s_min + s_avg + s_max
        rows = (s_min, s_avg, s_max,
                s_min * s_tot, s_avg * s_tot, s_max * s_tot)
        for i, r in enumerate(rows):
            mom_ref[:, i:i + 1, :] = (mom_ref[:, i:i + 1, :]
                                      + jnp.where(valid, r, 0.0))

    cmin, csum, cmax, mom = pl.pallas_call(
        stats_kernel,
        out_shape=(
            jax.ShapeDtypeStruct((B, C, 1), jnp.float32),
            jax.ShapeDtypeStruct((B, C, 1), jnp.float32),
            jax.ShapeDtypeStruct((B, C, 1), jnp.float32),
            jax.ShapeDtypeStruct((B, _MOM_ROWS, T), jnp.float32),
        ),
        grid_spec=pltpu.PrefetchScalarGridSpec(
            num_scalar_prefetch=0,
            grid=(B, nT),
            in_specs=[pl.BlockSpec((1, C, T), lambda b, t: (b, 0, t))],
            out_specs=(
                pl.BlockSpec((1, C, 1), lambda b, t: (b, 0, 0)),
                pl.BlockSpec((1, C, 1), lambda b, t: (b, 0, 0)),
                pl.BlockSpec((1, C, 1), lambda b, t: (b, 0, 0)),
                pl.BlockSpec((1, _MOM_ROWS, T), lambda b, t: (b, 0, 0)),
            ),
        ),
        compiler_params=pltpu.CompilerParams(
            dimension_semantics=("parallel", "arbitrary"),
            vmem_limit_bytes=vmem_limit_bytes),
    )(xf)

    # ---- tiny per-batch finalize (O(B*C) scalars) as plain JAX glue ----
    p_min = cmin[:, :, 0]
    p_avg = csum[:, :, 0] * (1.0 / HW)
    p_max = cmax[:, :, 0]
    m_min = p_min - jnp.mean(p_min, axis=1, keepdims=True)
    m_avg = p_avg - jnp.mean(p_avg, axis=1, keepdims=True)
    m_max = p_max - jnp.mean(p_max, axis=1, keepdims=True)
    t_ch = m_min + m_avg + m_max
    w0 = jnp.sum(m_min * t_ch, axis=1) / (C - 1)
    w1 = jnp.sum(m_avg * t_ch, axis=1) / (C - 1)
    w2 = jnp.sum(m_max * t_ch, axis=1) / (C - 1)
    mix_vec = (p_min * w0[:, None] + p_avg * w1[:, None]
               + p_max * w2[:, None]) / 3.0
    mix_vec = mix_vec[:, :, None].astype(jnp.float32)            # (B, C, 1)

    mom_sum = jnp.sum(mom, axis=2)                               # (B, 8)
    s1 = mom_sum[:, 0:3]                                         # sum_p s_i
    r1 = mom_sum[:, 3:6]                                         # sum_p s_i * t_p
    mean_i = s1 * (1.0 / HW)
    mean_t = jnp.sum(mean_i, axis=1, keepdims=True)
    # Row sums of the spatial 3x3 covariance: cov-row-sum = (R_i - HW*m_i*m_t)/(HW-1)
    w_sp = (r1 - HW * mean_i * mean_t) / (HW - 1)                # (B, 3)
    w_sp = w_sp[:, None, :].astype(jnp.float32)                  # (B, 1, 3)

    # ---- pass 2: re-stream x in HW tiles and apply x + mix + smix ----
    def apply_kernel(x_ref, mix_ref, w_ref, o_ref):
        x = x_ref[...].astype(jnp.float32)                       # (1, C, T)
        s_min = jnp.min(x, axis=1, keepdims=True)
        s_avg = jnp.mean(x, axis=1, keepdims=True)
        s_max = jnp.max(x, axis=1, keepdims=True)
        w = w_ref[...]                                           # (1, 1, 3)
        smix = (s_min * w[:, :, 0:1] + s_avg * w[:, :, 1:2]
                + s_max * w[:, :, 2:3]) * jnp.float32(1.0 / 3.0)
        o_ref[...] = (x + mix_ref[...] + smix).astype(o_ref.dtype)

    return pl.pallas_call(
        apply_kernel,
        out_shape=jax.ShapeDtypeStruct((B, C, HW), xf.dtype),
        grid_spec=pltpu.PrefetchScalarGridSpec(
            num_scalar_prefetch=0,
            grid=(B, nT),
            in_specs=[
                pl.BlockSpec((1, C, T), lambda b, t: (b, 0, t)),
                pl.BlockSpec((1, C, 1), lambda b, t: (b, 0, 0)),
                pl.BlockSpec((1, 1, 3), lambda b, t: (b, 0, 0)),
            ],
            out_specs=pl.BlockSpec((1, C, T), lambda b, t: (b, 0, t)),
        ),
        input_output_aliases={0: 0},
        compiler_params=pltpu.CompilerParams(
            dimension_semantics=("parallel", "parallel"),
            vmem_limit_bytes=vmem_limit_bytes),
    )(xf, mix_vec, w_sp)


# ---------------------------------------------------------------------------
# Wrapper: VMEM budgeting + path / tile selection.
# ---------------------------------------------------------------------------
def _choose_batch_tile(B, C, HW, itemsize, vmem_budget):
    """Largest batch tile whose working set fits VMEM, preferring >=2 grid steps
    so both v7x TensorCores get work."""
    per_elem = 4 * itemsize + 12        # 2x-buffered in + out, plus f32 temps
    divisors = [d for d in range(1, B + 1) if B % d == 0]
    fits = [d for d in divisors if d * C * HW * per_elem <= vmem_budget]
    if not fits:
        return None                     # fall back to the HW-tiled two-pass path
    multi_step = [d for d in fits if B // d >= 2]
    return max(multi_step) if multi_step else max(fits)


def mix_spatial_channel_attention(x, *, force_tiled=False, hw_tile=None,
                                  vmem_limit_bytes=None):
    """x: (B, C, H, W) float array (NCHW). Returns (B, C, H, W)."""
    B, C, H, W = x.shape
    HW = H * W
    xf = x.reshape(B, C, HW)
    itemsize = x.dtype.itemsize

    if vmem_limit_bytes is None:
        try:
            cap = int(pltpu.get_tpu_info().vmem_capacity_bytes)
        except Exception:
            cap = 64 << 20              # conservative: v7x per-TensorCore VMEM
        vmem_limit_bytes = int(min(cap - (8 << 20), 100 << 20))
    vmem_budget = vmem_limit_bytes - (4 << 20)

    bt = None if force_tiled else _choose_batch_tile(B, C, HW, itemsize, vmem_budget)
    if bt is not None:
        out = _msca_single_pass(xf, bt, vmem_limit_bytes)
    else:
        out = _msca_two_pass(xf, hw_tile, itemsize, vmem_budget, vmem_limit_bytes)
    return out.reshape(B, C, H, W)


# ---------------------------------------------------------------------------
# Pure-JAX reference (mirrors the PyTorch forward, residual=True, softmax=False).
# ---------------------------------------------------------------------------
def _reference(x):
    B, C, H, W = x.shape
    x = x.astype(jnp.float32)
    avg_pool = jnp.mean(x, axis=(2, 3))
    max_pool = jnp.max(x, axis=(2, 3))
    min_pool = jnp.min(x, axis=(2, 3))
    mix = jnp.stack([min_pool, avg_pool, max_pool], 1)              # (B, 3, C)
    mix_c = mix - jnp.mean(mix, axis=2, keepdims=True)
    cov_mix = jnp.einsum('bic,bjc->bij', mix_c, mix_c) / (C - 1)
    mix = mix * jnp.sum(cov_mix, axis=1)[:, :, None]
    mix = (jnp.sum(mix, axis=1) / 3.0)[:, :, None, None]            # (B, C, 1, 1)

    s_avg = jnp.mean(x, axis=1, keepdims=True)
    s_max = jnp.max(x, axis=1, keepdims=True)
    s_min = jnp.min(x, axis=1, keepdims=True)
    smix = jnp.stack([s_min, s_avg, s_max], 1)                      # (B, 3, 1, H, W)
    sf = smix.reshape(B, 3, H * W)
    sf_c = sf - jnp.mean(sf, axis=2, keepdims=True)
    cov_smix = jnp.einsum('bip,bjp->bij', sf_c, sf_c) / (H * W - 1)
    smix = smix * jnp.sum(cov_smix, axis=2)[:, :, None, None, None]
    smix = jnp.sum(smix, axis=1) / 3.0                              # (B, 1, H, W)
    return x + mix + smix


if __name__ == "__main__":
    k0, k1 = jax.random.split(jax.random.PRNGKey(0))

    # 1) Small shape -> single-pass batched path.
    B, C, H, W = 2, 4, 16, 16
    x = jax.random.normal(k0, (B, C, H, W), dtype=jnp.float32)
    ref = _reference(x)
    out = jax.block_until_ready(mix_spatial_channel_attention(x))
    assert out.shape == (B, C, H, W)
    err = float(jnp.max(jnp.abs(out - ref)))
    assert jnp.allclose(out, ref, atol=5e-4, rtol=5e-4), err

    # 2) Force the HW-tiled two-pass streaming path (exercises masked partial
    #    tiles: HW = 384 with 256-lane tiles).
    B2, C2, H2, W2 = 2, 8, 16, 24
    x2 = jax.random.normal(k1, (B2, C2, H2, W2), dtype=jnp.float32)
    ref2 = _reference(x2)
    out2 = jax.block_until_ready(
        mix_spatial_channel_attention(x2, force_tiled=True, hw_tile=256))
    err2 = float(jnp.max(jnp.abs(out2 - ref2)))
    assert jnp.allclose(out2, ref2, atol=5e-4, rtol=5e-4), err2

    print("KERNEL_OK")
</pallas_src>

<mosaic_0001>
module attributes {stable_mosaic.version = 11 : i64} {
  func.func @_msca_fused_kernel(%arg0: i32, %arg1: memref<1x4x256xf32, #tpu.memory_space<vmem>>, %arg2: memref<1x4x256xf32, #tpu.memory_space<vmem>>) attributes {dimension_semantics = [#tpu.dimension_semantics<parallel>], iteration_bounds = array<i64: 2>, scalar_prefetch = 0 : i64, scratch_operands = 0 : i64, tpu.core_type = #tpu.core_type<tc>, window_params = [{transform_indices = @transform_0, window_bounds = array<i64: 1, 4, 256>}, {transform_indices = @transform_1, window_bounds = array<i64: 1, 4, 256>}]} {
    %c0 = arith.constant 0 : index
    %c0_0 = arith.constant 0 : index
    %c0_1 = arith.constant 0 : index
    %0 = vector.load %arg1[%c0, %c0_0, %c0_1] : memref<1x4x256xf32, #tpu.memory_space<vmem>>, vector<1x4x256xf32>
    %cst = arith.constant 1.000000e+00 : f32
    %cst_2 = arith.constant 3.000000e+00 : f32
    %1 = arith.divf %cst, %cst_2 : f32
    %cst_3 = arith.constant 1.000000e+00 : f32
    %cst_4 = arith.constant 2.550000e+02 : f32
    %2 = arith.divf %cst_3, %cst_4 : f32
    %cst_5 = arith.constant dense<0x7F800000> : vector<1x4xf32>
    %3 = vector.multi_reduction <minimumf>, %0, %cst_5 [2] : vector<1x4x256xf32> to vector<1x4xf32>
    %4 = vector.shape_cast %3 : vector<1x4xf32> to vector<1x4x1xf32>
    %cst_6 = arith.constant dense<0.000000e+00> : vector<1x4xf32>
    %5 = vector.multi_reduction <add>, %0, %cst_6 [2] : vector<1x4x256xf32> to vector<1x4xf32>
    %6 = vector.shape_cast %5 : vector<1x4xf32> to vector<1x4x1xf32>
    %cst_7 = arith.constant 2.560000e+02 : f32
    %7 = vector.broadcast %cst_7 : f32 to vector<1x4x1xf32>
    %8 = arith.divf %6, %7 : vector<1x4x1xf32>
    %cst_8 = arith.constant dense<0xFF800000> : vector<1x4xf32>
    %9 = vector.multi_reduction <maximumf>, %0, %cst_8 [2] : vector<1x4x256xf32> to vector<1x4xf32>
    %10 = vector.shape_cast %9 : vector<1x4xf32> to vector<1x4x1xf32>
    %cst_9 = arith.constant dense<0.000000e+00> : vector<1x1xf32>
    %11 = vector.multi_reduction <add>, %4, %cst_9 [1] : vector<1x4x1xf32> to vector<1x1xf32>
    %12 = vector.shape_cast %11 : vector<1x1xf32> to vector<1x1x1xf32>
    %cst_10 = arith.constant 4.000000e+00 : f32
    %13 = vector.broadcast %cst_10 : f32 to vector<1x1x1xf32>
    %14 = arith.divf %12, %13 : vector<1x1x1xf32>
    %15 = vector.broadcast %14 : vector<1x1x1xf32> to vector<1x4x1xf32>
    %16 = arith.subf %4, %15 : vector<1x4x1xf32>
    %cst_11 = arith.constant dense<0.000000e+00> : vector<1x1xf32>
    %17 = vector.multi_reduction <add>, %8, %cst_11 [1] : vector<1x4x1xf32> to vector<1x1xf32>
    %18 = vector.shape_cast %17 : vector<1x1xf32> to vector<1x1x1xf32>
    %cst_12 = arith.constant 4.000000e+00 : f32
    %19 = vector.broadcast %cst_12 : f32 to vector<1x1x1xf32>
    %20 = arith.divf %18, %19 : vector<1x1x1xf32>
    %21 = vector.broadcast %20 : vector<1x1x1xf32> to vector<1x4x1xf32>
    %22 = arith.subf %8, %21 : vector<1x4x1xf32>
    %cst_13 = arith.constant dense<0.000000e+00> : vector<1x1xf32>
    %23 = vector.multi_reduction <add>, %10, %cst_13 [1] : vector<1x4x1xf32> to vector<1x1xf32>
    %24 = vector.shape_cast %23 : vector<1x1xf32> to vector<1x1x1xf32>
    %cst_14 = arith.constant 4.000000e+00 : f32
    %25 = vector.broadcast %cst_14 : f32 to vector<1x1x1xf32>
    %26 = arith.divf %24, %25 : vector<1x1x1xf32>
    %27 = vector.broadcast %26 : vector<1x1x1xf32> to vector<1x4x1xf32>
    %28 = arith.subf %10, %27 : vector<1x4x1xf32>
    %29 = arith.addf %16, %22 : vector<1x4x1xf32>
    %30 = arith.addf %29, %28 : vector<1x4x1xf32>
    %31 = arith.mulf %16, %30 : vector<1x4x1xf32>
    %cst_15 = arith.constant dense<0.000000e+00> : vector<1x1xf32>
    %32 = vector.multi_reduction <add>, %31, %cst_15 [1] : vector<1x4x1xf32> to vector<1x1xf32>
    %33 = vector.shape_cast %32 : vector<1x1xf32> to vector<1x1x1xf32>
    %34 = vector.broadcast %1 : f32 to vector<1x1x1xf32>
    %35 = arith.mulf %33, %34 : vector<1x1x1xf32>
    %36 = arith.mulf %22, %30 : vector<1x4x1xf32>
    %cst_16 = arith.constant dense<0.000000e+00> : vector<1x1xf32>
    %37 = vector.multi_reduction <add>, %36, %cst_16 [1] : vector<1x4x1xf32> to vector<1x1xf32>
    %38 = vector.shape_cast %37 : vector<1x1xf32> to vector<1x1x1xf32>
    %39 = vector.broadcast %1 : f32 to vector<1x1x1xf32>
    %40 = arith.mulf %38, %39 : vector<1x1x1xf32>
    %41 = arith.mulf %28, %30 : vector<1x4x1xf32>
    %cst_17 = arith.constant dense<0.000000e+00> : vector<1x1xf32>
    %42 = vector.multi_reduction <add>, %41, %cst_17 [1] : vector<1x4x1xf32> to vector<1x1xf32>
    %43 = vector.shape_cast %42 : vector<1x1xf32> to vector<1x1x1xf32>
    %44 = vector.broadcast %1 : f32 to vector<1x1x1xf32>
    %45 = arith.mulf %43, %44 : vector<1x1x1xf32>
    %46 = vector.broadcast %35 : vector<1x1x1xf32> to vector<1x4x1xf32>
    %47 = arith.mulf %4, %46 : vector<1x4x1xf32>
    %48 = vector.broadcast %40 : vector<1x1x1xf32> to vector<1x4x1xf32>
    %49 = arith.mulf %8, %48 : vector<1x4x1xf32>
    %50 = arith.addf %47, %49 : vector<1x4x1xf32>
    %51 = vector.broadcast %45 : vector<1x1x1xf32> to vector<1x4x1xf32>
    %52 = arith.mulf %10, %51 : vector<1x4x1xf32>
    %53 = arith.addf %50, %52 : vector<1x4x1xf32>
    %cst_18 = arith.constant 0.333333343 : f32
    %54 = vector.broadcast %cst_18 : f32 to vector<1x4x1xf32>
    %55 = arith.mulf %53, %54 : vector<1x4x1xf32>
    %cst_19 = arith.constant dense<0x7F800000> : vector<1x256xf32>
    %56 = vector.multi_reduction <minimumf>, %0, %cst_19 [1] : vector<1x4x256xf32> to vector<1x256xf32>
    %57 = vector.shape_cast %56 : vector<1x256xf32> to vector<1x1x256xf32>
    %cst_20 = arith.constant dense<0.000000e+00> : vector<1x256xf32>
    %58 = vector.multi_reduction <add>, %0, %cst_20 [1] : vector<1x4x256xf32> to vector<1x256xf32>
    %59 = vector.shape_cast %58 : vector<1x256xf32> to vector<1x1x256xf32>
    %cst_21 = arith.constant 4.000000e+00 : f32
    %60 = vector.broadcast %cst_21 : f32 to vector<1x1x256xf32>
    %61 = arith.divf %59, %60 : vector<1x1x256xf32>
    %cst_22 = arith.constant dense<0xFF800000> : vector<1x256xf32>
    %62 = vector.multi_reduction <maximumf>, %0, %cst_22 [1] : vector<1x4x256xf32> to vector<1x256xf32>
    %63 = vector.shape_cast %62 : vector<1x256xf32> to vector<1x1x256xf32>
    %cst_23 = arith.constant dense<0.000000e+00> : vector<1x1xf32>
    %64 = vector.multi_reduction <add>, %57, %cst_23 [2] : vector<1x1x256xf32> to vector<1x1xf32>
    %65 = vector.shape_cast %64 : vector<1x1xf32> to vector<1x1x1xf32>
    %cst_24 = arith.constant 2.560000e+02 : f32
    %66 = vector.broadcast %cst_24 : f32 to vector<1x1x1xf32>
    %67 = arith.divf %65, %66 : vector<1x1x1xf32>
    %68 = vector.broadcast %67 : vector<1x1x1xf32> to vector<1x1x256xf32>
    %69 = arith.subf %57, %68 : vector<1x1x256xf32>
    %cst_25 = arith.constant dense<0.000000e+00> : vector<1x1xf32>
    %70 = vector.multi_reduction <add>, %61, %cst_25 [2] : vector<1x1x256xf32> to vector<1x1xf32>
    %71 = vector.shape_cast %70 : vector<1x1xf32> to vector<1x1x1xf32>
    %cst_26 = arith.constant 2.560000e+02 : f32
    %72 = vector.broadcast %cst_26 : f32 to vector<1x1x1xf32>
    %73 = arith.divf %71, %72 : vector<1x1x1xf32>
    %74 = vector.broadcast %73 : vector<1x1x1xf32> to vector<1x1x256xf32>
    %75 = arith.subf %61, %74 : vector<1x1x256xf32>
    %cst_27 = arith.constant dense<0.000000e+00> : vector<1x1xf32>
    %76 = vector.multi_reduction <add>, %63, %cst_27 [2] : vector<1x1x256xf32> to vector<1x1xf32>
    %77 = vector.shape_cast %76 : vector<1x1xf32> to vector<1x1x1xf32>
    %cst_28 = arith.constant 2.560000e+02 : f32
    %78 = vector.broadcast %cst_28 : f32 to vector<1x1x1xf32>
    %79 = arith.divf %77, %78 : vector<1x1x1xf32>
    %80 = vector.broadcast %79 : vector<1x1x1xf32> to vector<1x1x256xf32>
    %81 = arith.subf %63, %80 : vector<1x1x256xf32>
    %82 = arith.addf %69, %75 : vector<1x1x256xf32>
    %83 = arith.addf %82, %81 : vector<1x1x256xf32>
    %84 = arith.mulf %69, %83 : vector<1x1x256xf32>
    %cst_29 = arith.constant dense<0.000000e+00> : vector<1x1xf32>
    %85 = vector.multi_reduction <add>, %84, %cst_29 [2] : vector<1x1x256xf32> to vector<1x1xf32>
    %86 = vector.shape_cast %85 : vector<1x1xf32> to vector<1x1x1xf32>
    %87 = vector.broadcast %2 : f32 to vector<1x1x1xf32>
    %88 = arith.mulf %86, %87 : vector<1x1x1xf32>
    %89 = arith.mulf %75, %83 : vector<1x1x256xf32>
    %cst_30 = arith.constant dense<0.000000e+00> : vector<1x1xf32>
    %90 = vector.multi_reduction <add>, %89, %cst_30 [2] : vector<1x1x256xf32> to vector<1x1xf32>
    %91 = vector.shape_cast %90 : vector<1x1xf32> to vector<1x1x1xf32>
    %92 = vector.broadcast %2 : f32 to vector<1x1x1xf32>
    %93 = arith.mulf %91, %92 : vector<1x1x1xf32>
    %94 = arith.mulf %81, %83 : vector<1x1x256xf32>
    %cst_31 = arith.constant dense<0.000000e+00> : vector<1x1xf32>
    %95 = vector.multi_reduction <add>, %94, %cst_31 [2] : vector<1x1x256xf32> to vector<1x1xf32>
    %96 = vector.shape_cast %95 : vector<1x1xf32> to vector<1x1x1xf32>
    %97 = vector.broadcast %2 : f32 to vector<1x1x1xf32>
    %98 = arith.mulf %96, %97 : vector<1x1x1xf32>
    %99 = vector.broadcast %88 : vector<1x1x1xf32> to vector<1x1x256xf32>
    %100 = arith.mulf %57, %99 : vector<1x1x256xf32>
    %101 = vector.broadcast %93 : vector<1x1x1xf32> to vector<1x1x256xf32>
    %102 = arith.mulf %61, %101 : vector<1x1x256xf32>
    %103 = arith.addf %100, %102 : vector<1x1x256xf32>
    %104 = vector.broadcast %98 : vector<1x1x1xf32> to vector<1x1x256xf32>
    %105 = arith.mulf %63, %104 : vector<1x1x256xf32>
    %106 = arith.addf %103, %105 : vector<1x1x256xf32>
    %cst_32 = arith.constant 0.333333343 : f32
    %107 = vector.broadcast %cst_32 : f32 to vector<1x1x256xf32>
    %108 = arith.mulf %106, %107 : vector<1x1x256xf32>
    %109 = vector.broadcast %55 : vector<1x4x1xf32> to vector<1x4x256xf32>
    %110 = arith.addf %0, %109 : vector<1x4x256xf32>
    %111 = vector.broadcast %108 : vector<1x1x256xf32> to vector<1x4x256xf32>
    %112 = arith.addf %110, %111 : vector<1x4x256xf32>
    %c0_33 = arith.constant 0 : index
    %c0_34 = arith.constant 0 : index
    %c0_35 = arith.constant 0 : index
    %113 = vector.load %arg2[%c0_33, %c0_34, %c0_35] : memref<1x4x256xf32, #tpu.memory_space<vmem>>, vector<1x4x256xf32>
    tpu.vector_store %arg2[%c0_33, %c0_34, %c0_35], %112 {strides = array<i32>} : memref<1x4x256xf32, #tpu.memory_space<vmem>>, vector<1x4x256xf32>,
    return
  }
  func.func @transform_0(%arg0: i32) -> (i32, i32, i32) {
    %c0_i32 = arith.constant 0 : i32
    %c0_i32_0 = arith.constant 0 : i32
    %c0_i32_1 = arith.constant 0 : i32
    return %arg0, %c0_i32, %c0_i32_0 : i32, i32, i32
  }
  func.func @transform_1(%arg0: i32) -> (i32, i32, i32) {
    %c0_i32 = arith.constant 0 : i32
    %c0_i32_0 = arith.constant 0 : i32
    %c0_i32_1 = arith.constant 0 : i32
    return %arg0, %c0_i32, %c0_i32_0 : i32, i32, i32
  }
}

</mosaic_0001>

<bundles_post_ra>
// kernel: tpu_custom_call.1
= control target key start
LH: loop header
LB: loop body
LE: loop exit
PB: predicated region body
PF: predicated region fallthrough
CT: control target
= control target key end

     0   :  { %6 = vsyncpa [#allocation3], 0  ;;  %s799_s0 = inlined_call_operand.hbm [shape: f32[2,4,256], index: 0, kind: input, shape index: {}, may-alias: {0,1}]   ;;  %s800_s1 = inlined_call_operand.hbm [shape: f32[2,4,256], index: 1, kind: output, shape index: {}, may-alias: {0,1}]  }
   0x1   :  { %8 = vsyncpa [#allocation3 + $0x1], 0 }
   0x2   :  { %9 = vsyncpa [#allocation4], 0 }
   0x3   :  { %11 = vsyncpa [#allocation4 + $0x1], 0  ;;  %s584_s6 = smov 0   ;;  %s586_s7 = smov 0  }
   0x4   :  { %s588_s8 = smov 0   ;;  %s590_s9 = smov 0  }
   0x5 LB: > { %s605_s10 = sadd.s32 4294967295, %s569_s9   ;;  %s409_s11 = sadd.s32 4294967294, %s569_s9   ;;  %s569_s9 = sphi %s590_s9, %s815_s9   ;;  %s565_s8 = sphi %s588_s8, %s814_s8   ;;  %s561_s7 = sphi %s586_s7, %s813_s7   ;;  %s557_s6 = sphi %s584_s6, %s812_s6  }
   0x6   : > { %s609_s12 = sadd.s32 1, %s569_s9   ;;  %s24_s13 = sadd.s32 1, %s565_s8 }
   0x7   : > { %s21_s14 = ssub.s32 %s569_s9, %s609_s12  ;;  %p31_p0 = scmp.ne.s32.totalorder %s565_s8, %s561_s7 }
   0x8   : > { %p22_p1 = scmp.eq.s32.totalorder %s21_s14, 0  ;;  %p32_p2 = scmp.eq.s32.totalorder %s569_s9, 0 }
   0x9   : > { %p37_p3 = scmp.ne.s32.totalorder %s561_s7, %s557_s6  ;;  %p38_p4 = scmp.eq.s32.totalorder %s605_s10, 0 }
   0xa   : > { %s621_s15 = scalar_select %p22_p1, %s565_s8, %s24_s13  }
   0xb   : > { %p623_p5 = por %p32_p2, %p31_p0  ;;  %p627_p6 = por %p38_p4, %p37_p3 }
   0xc   : > { %p61_p7 = scmp.eq.s32.totalorder %s605_s10, 1  ;;  %p67_p8 = scmp.eq.s32.totalorder %s409_s11, 1 }
   0xd   : > { %p437_p10 = scmp.lt.s32.totalorder %s569_s9, 2  ;;  %s87_s20 = sand.u32 1, %s565_s8  }
   0xe   : > { %p634_p11 = por %p61_p7, %p31_p0  ;;  %p638_p12 = por %p67_p8, %p37_p3 }
   0xf   : > { %s423_s21 = sshll.u32 %s569_s9, 7  ;;  %s412_s22 = sshll.u32 %s87_s20, 3 }
  0x10   : > { %s804_s18 = scalar_select %p634_p11, 1, 0 }
  0x11   : > { %s805_s19 = scalar_select %p638_p12, 1, 0 }
  0x12   : > { %s647_s25 = scalar_lea.hbm %s799_s0, %s423_s21  ;;  %s91_s26 = scalar_lea.vmem [#allocation2], %s412_s22 }
  0x13   : > { %s99_s27 = sshll.u32 %s91_s26, 4  ;;  %p651_p13 = pnand %p437_p10, %p623_p5  ;;  %s655_s27 = int_to_ptr.vmem [resolvable:$true] %s99_s27 }
  0x14   : > { %s88_s29 = scalar_lea.sflag [#allocation3], %s87_s20  ;;  %s473_s30 = scalar_lea.hbm %s647_s25, 128 }
  0x15   : > { %p474_p2 = scmp.ne.s32.totalorder %s647_s25, %s473_s30  ;;  %p475_p3 = pneg %p651_p13 }
  0x16   : > { %s478_s4 = scalar_lea.hbm %s799_s0, 256  ;;  %p479_p5 = scmp.lt.u32.totalorder %s647_s25, %s799_s0 }
  0x17   : > { %p476_p4 = pnand %p475_p3, %p474_p2  ;;  %p480_p8 = scmp.lt.u32.totalorder %s478_s4, %s473_s30 }
  0x18   : > { %p482_p9 = scmp.lt.u32.totalorder %s473_s30, %s647_s25 }
  0x19   : > { %p477_p7 = pneg %p476_p4  ;;  %p481_p10 = por %p480_p8, %p479_p5 }
  0x1b   : > { %p483_p0 = por %p482_p9, %p481_p10 }
  0x1d   : > { %p484_p1 = pnand %p483_p0, %p477_p7 }
  0x1f   : > { %487 = shalt.err (!%p484_p1)
}
  0x20   : > { %s488_s13 = scalar_lea.vmem %s655_s27, 128  ;;  %s571_s14 = smov [#allocation2]  }
  0x21   : > { %p489_p2 = scmp.ne.s32.totalorder %s655_s27, %s488_s13  ;;  %s493_s16 = sshll.u32 %s571_s14, 4  ;;  %s494_s16 = int_to_ptr.vmem [resolvable:$false] %s493_s16 }
  0x22   : > { %s495_s20 = scalar_lea.vmem %s494_s16, 256  ;;  %p496_p11 = scmp.lt.s32.totalorder %s655_s27, %s494_s16 }
  0x23   : > { %p491_p4 = pnand %p489_p2, %p475_p3  ;;  %p497_p5 = scmp.lt.s32.totalorder %s495_s20, %s488_s13 }
  0x25   : > { %p492_p12 = pneg %p491_p4  ;;  %p498_p8 = por %p497_p5, %p496_p11 }
  0x27   : > { %p499_p9 = pnand %p498_p8, %p492_p12 }
  0x29   : > { %502 = shalt.err (!%p499_p9)
}
  0x2a   : > { %432 = dma.hbm_to_vmem [thread:$0]  (!%p651_p13), %s647_s25, 128, %s655_s27, %s88_s29  }
  0x2b   : > { %p807_p0 = scmp.lt.s32.totalorder %s569_s9, 3  ;;  %p808_p1 = scmp.ge.s32.totalorder %s569_s9, 1 }
  0x2d   : > { %p105_p3 = pnand %p808_p1, %p807_p0 }
  0x2e   : > { %s689_s21 = sand.u32 (!%p105_p3), 1, %s561_s7  }
  0x2f   : > { %108 = sbr.rel (%p105_p3) target bundleno = 403 (0x193), region = 24  ;;  %s416_s22 = sshll.u32 (!%p105_p3), %s689_s21, 3 }
  0x30   : > { %s111_s23 = scalar_lea.sflag (!%p105_p3), [#allocation3], %s689_s21  ;;  %s114_s24 = scalar_lea.vmem (!%p105_p3), [#allocation2], %s416_s22 }
  0x36   : > { %548 = dma.done.wait (%p627_p6), %s111_s23, 128  }
  0x37   : > { %550 = vsyncadd (%p627_p6), %s111_s23, 4294967168  ;;  %vm137_vm0 = vcmask 1043456   ;;  %v699_v0 = vld [vmem:[%s114_s24] sm:$0xff]  ;;  %s424_s17 = sshll.u32 %s605_s10, 7  ;;  %s132_s25 = scalar_lea.vmem [#allocation5], %s416_s22 }
  0x38   : > { %v135_v1 = vcombine.high %v699_v0, %v699_v0  ;;  %v138_v2 = vsel %vm137_vm0, %v699_v0, inf  ;;  %v143_v3 = vsel %vm137_vm0, %v699_v0, 0.0  ;;  %v150_v4 = vsel %vm137_vm0, %v699_v0, -inf  ;;  %s339_s26 = sshll.u32 %s132_s25, 4  ;;  %s755_s29 = scalar_lea.hbm %s800_s1, %s424_s17  ;;  %s757_s26 = int_to_ptr.vmem [resolvable:$true] %s339_s26 }
  0x39   : > { %v218_v5 = vrot.slane %v138_v2, 4  ;;  %v230_v6 = vrot.slane %v143_v3, 4  ;;  %v244_v7 = vrot.slane %v150_v4, 4  ;;  %s325_s30 = scalar_lea.sflag [#allocation4], %s689_s21  ;;  %s503_s10 = scalar_lea.vmem %s757_s26, 128 }
  0x3a   : > { %v139_v8 = vsel %vm137_vm0, %v135_v1, inf  ;;  %v144_v9 = vsel %vm137_vm0, %v135_v1, 0.0  ;;  %v151_v10 = vsel %vm137_vm0, %v135_v1, -inf  ;;  %p504_p6 = scmp.ne.s32.totalorder %s757_s26, %s503_s10  ;;  %p809_p11 = scmp.ne.s32.totalorder %s804_s18, 0 }
  0x3b   : > { %v219_v11 = vmin.f32 %v138_v2, %v218_v5  ;;  %v224_v12 = vrot.slane %v139_v8, 4  ;;  %v231_v13 = vadd.f32 %v230_v6, %v143_v3  ;;  %v236_v14 = vrot.slane %v144_v9, 4  ;;  %s573_s2 = smov [#allocation5]  }
  0x3c   : > { %v245_v15 = vmax.f32 %v150_v4, %v244_v7  ;;  %v250_v16 = vrot.slane %v151_v10, 4  ;;  %v145_v49 = vadd.f32 %v144_v9, %v143_v3  ;;  %v140_v50 = vmin.f32 %v138_v2, %v139_v8  ;;  %p505_p12 = pnand %p504_p6, %p809_p11  ;;  %s507_s3 = sshll.u32 %s573_s2, 4  ;;  %s508_s3 = int_to_ptr.vmem [resolvable:$false] %s507_s3 }
  0x3d   : > { %v220_v17 = vrot.slane %v219_v11, 2  ;;  %v225_v18 = vmin.f32 %v139_v8, %v224_v12  ;;  %v232_v19 = vrot.slane %v231_v13, 2  ;;  %v237_v20 = vadd.f32 %v236_v14, %v144_v9  ;;  %s509_s4 = scalar_lea.vmem %s508_s3, 256  ;;  %p510_p7 = scmp.lt.s32.totalorder %s757_s26, %s508_s3 }
  0x3e   : > { %v246_v21 = vrot.slane %v245_v15, 2  ;;  %v251_v22 = vmax.f32 %v151_v10, %v250_v16  ;;  %v152_v51 = vmax.f32 %v150_v4, %v151_v10  ;;  %p506_p13 = pneg %p505_p12  ;;  %p511_p10 = scmp.lt.s32.totalorder %s509_s4, %s503_s10 }
  0x3f   : > { %v221_v23 = vmin.f32 %v219_v11, %v220_v17  ;;  %v226_v24 = vrot.slane %v225_v18, 2  ;;  %v233_v25 = vadd.f32 %v232_v19, %v231_v13  ;;  %v238_v26 = vrot.slane %v237_v20, 2 }
  0x40   : > { %v247_v27 = vmax.f32 %v245_v15, %v246_v21  ;;  %v252_v28 = vrot.slane %v251_v22, 2  ;;  %p512_p2 = por %p511_p10, %p510_p7 }
  0x41   : > { %v222_v29 = vrot.slane %v221_v23, 1  ;;  %v227_v30 = vmin.f32 %v225_v18, %v226_v24  ;;  %v234_v31 = vrot.slane %v233_v25, 1  ;;  %v239_v32 = vadd.f32 %v238_v26, %v237_v20 }
  0x42   : > { %v248_v33 = vrot.slane %v247_v27, 1  ;;  %v253_v34 = vmax.f32 %v251_v22, %v252_v28  ;;  %p513_p4 = pnand %p512_p2, %p506_p13 }
  0x43   : > { %v712_v35 = vmin.f32 %v221_v23, %v222_v29  ;;  %v228_v36 = vrot.slane %v227_v30, 1  ;;  %v235_v37 = vadd.f32 %v234_v31, %v233_v25  ;;  %v240_v38 = vrot.slane %v239_v32, 1 }
  0x44   : > { %v714_v39 = vmax.f32 %v247_v27, %v248_v33  ;;  %v254_v40 = vrot.slane %v253_v34, 1 }
  0x45   : > { %v716_v41 = vmin.f32 %v227_v30, %v228_v36  ;;  %v241_v42 = vadd.f32 %v240_v38, %v239_v32  ;;  %v718_v43 = vmul.f32 0.25, %v235_v37 }
  0x46   : > { %v720_v44 = vmax.f32 %v253_v34, %v254_v40 }
  0x47   : > { %v256_v45 = vadd.f32 %v716_v41, %v712_v35  ;;  %v724_v46 = vmul.f32 0.25, %v241_v42 }
  0x48   : > { %v268_v47 = vadd.f32 %v720_v44, %v714_v39 }
  0x49   : > { %257 = vadd.xlane.f32.xlu0 %v256_v45  ;;  %v262_v48 = vadd.f32 %v724_v46, %v718_v43 }
  0x4a   : > { %269 = vadd.xlane.f32.xlu1 %v268_v47 }
  0x4d   : > { %263 = vadd.xlane.f32.xlu0 %v262_v48 }
  0x4e   : > { %146 = vadd.xlane.f32.xlu1 %v145_v49 }
  0x51   : > { %141 = vmin.xlane.f32.xlu0 %v140_v50 }
  0x52   : > { %153 = vmax.xlane.f32.xlu1 %v152_v51 }
  0xd6   : > { %v258_v52 = vpop.xlane.xlu0 %257 }
  0xd7   : > { %v270_v53 = vpop.xlane.xlu1 %269  ;;  %v259_v54 = vmul.f32 0.00390625, %v258_v52 }
  0xd8   : > { %v271_v55 = vmul.f32 0.00390625, %v270_v53 }
  0xd9   : > { %v260_v58 = vsub.f32 %v712_v35, %v259_v54  ;;  %v261_v59 = vsub.f32 %v716_v41, %v259_v54 }
  0xda   : > { %v264_v56 = vpop.xlane.xlu0 %263  ;;  %v272_v62 = vsub.f32 %v714_v39, %v271_v55  ;;  %v273_v63 = vsub.f32 %v720_v44, %v271_v55 }
  0xdb   : > { %v265_v57 = vmul.f32 0.00390625, %v264_v56  ;;  %v147_v14 = vpop.xlane.xlu1 %146 }
  0xdc   : > { %v149_v15 = vmul.f32 0.00390625, %v147_v14 }
  0xdd   : > { %v266_v60 = vsub.f32 %v718_v43, %v265_v57  ;;  %v267_v61 = vsub.f32 %v724_v46, %v265_v57 }
  0xde   : > { %v142_v16 = vpop.xlane.xlu0 %141  ;;  %v165_v17 = vsel %vm137_vm0, %v149_v15, 0.0 }
  0xdf   : > { %v274_v1 = vadd.f32 %v266_v60, %v260_v58  ;;  %v275_v2 = vadd.f32 %v267_v61, %v261_v59  ;;  %v155_v18 = vsel %vm137_vm0, %v142_v16, 0.0  ;;  %v154_v19 = vpop.xlane.xlu1 %153  ;;  %v166_v20 = vrot.slane %v165_v17, 4 }
  0xe0   : > { %v156_v21 = vrot.slane %v155_v18, 4  ;;  %v174_v22 = vsel %vm137_vm0, %v154_v19, 0.0 }
  0xe1   : > { %v276_v3 = vadd.f32 %v274_v1, %v272_v62  ;;  %v277_v4 = vadd.f32 %v275_v2, %v273_v63  ;;  %v167_v23 = vadd.f32 %v166_v20, %v165_v17  ;;  %v175_v25 = vrot.slane %v174_v22, 4 }
  0xe2   : > { %v157_v24 = vadd.f32 %v156_v21, %v155_v18 }
  0xe3   : > { %v284_v5 = vmul.f32 %v276_v3, %v266_v60  ;;  %v285_v6 = vmul.f32 %v277_v4, %v267_v61  ;;  %v278_v7 = vmul.f32 %v276_v3, %v260_v58  ;;  %v279_v8 = vmul.f32 %v277_v4, %v261_v59 }
  0xe4   : > { %v290_v11 = vmul.f32 %v276_v3, %v272_v62  ;;  %v291_v12 = vmul.f32 %v277_v4, %v273_v63  ;;  %v168_v26 = vrot.slane %v167_v23, 2  ;;  %v158_v27 = vrot.slane %v157_v24, 2 }
  0xe5   : > { %v286_v9 = vadd.f32 %v285_v6, %v284_v5  ;;  %v280_v10 = vadd.f32 %v279_v8, %v278_v7  ;;  %v176_v28 = vadd.f32 %v175_v25, %v174_v22  ;;  %v312_v22 = vlaneseq }
  0xe6   : > { %v292_v13 = vadd.f32 %v291_v12, %v290_v11  ;;  %v169_v29 = vadd.f32 %v168_v26, %v167_v23  ;;  %v159_v30 = vadd.f32 %v158_v27, %v157_v24  ;;  %v572_v23 = vmov 839922192  }
  0xe7   : > { %287 = vadd.xlane.f32.xlu1 %v286_v9  ;;  %281 = vadd.xlane.f32.xlu0 %v280_v10  ;;  %v177_v31 = vrot.slane %v176_v28, 2  ;;  %v310_v24 = vunpack.c.l.s4 %v572_v23  ;;  %v313_v27 = vshrl.u32 %v312_v22, 7 }
  0xe8   : > { %v170_v32 = vrot.slane %v169_v29, 1  ;;  %v160_v33 = vrot.slane %v159_v30, 1 }
  0xe9   : > { %v178_v34 = vadd.f32 %v177_v31, %v176_v28 }
  0xea   : > { %v171_v36 = vadd.f32 %v170_v32, %v169_v29  ;;  %v161_v37 = vadd.f32 %v160_v33, %v159_v30  ;;  %v311_v30 = vunpack.c.0.s8 %v310_v24 }
  0xeb   : > { %293 = vadd.xlane.f32.xlu0 %v292_v13  ;;  %v179_v38 = vrot.slane %v178_v34, 1 }
  0xec   : > { %v172_v40 = vmul.f32 0.25, %v171_v36  ;;  %v163_v42 = vmul.f32 0.25, %v161_v37 }
  0xed   : > { %v180_v45 = vadd.f32 %v179_v38, %v178_v34  ;;  %v314_v38 = vsub.s32 %v311_v30, %v313_v27 }
  0xee   : > { %v173_v47 = vsub.f32 %v149_v15, %v172_v40  ;;  %v164_v48 = vsub.f32 %v142_v16, %v163_v42 }
  0xef   : > { %v181_v49 = vmul.f32 0.25, %v180_v45 }
  0xf0   : > { %v183_v50 = vadd.f32 %v173_v47, %v164_v48 }
  0xf1   : > { %v182_v51 = vsub.f32 %v154_v19, %v181_v49 }
  0xf3   : > { %v184_v52 = vadd.f32 %v183_v50, %v182_v51 }
  0xf5   : > { %v185_v53 = vmul.f32 %v184_v52, %v164_v48  ;;  %v194_v54 = vmul.f32 %v184_v52, %v173_v47  ;;  %v203_v57 = vmul.f32 %v184_v52, %v182_v51 }
  0xf7   : > { %v186_v55 = vsel %vm137_vm0, %v185_v53, 0.0  ;;  %v195_v56 = vsel %vm137_vm0, %v194_v54, 0.0  ;;  %v204_v60 = vsel %vm137_vm0, %v203_v57, 0.0 }
  0xf8   : > { %v187_v58 = vrot.slane %v186_v55, 4  ;;  %v196_v59 = vrot.slane %v195_v56, 4  ;;  %v205_v63 = vrot.slane %v204_v60, 4 }
  0xfa   : > { %v188_v61 = vadd.f32 %v187_v58, %v186_v55  ;;  %v197_v62 = vadd.f32 %v196_v59, %v195_v56  ;;  %v206_v3 = vadd.f32 %v205_v63, %v204_v60 }
  0xfc   : > { %v189_v1 = vrot.slane %v188_v61, 2  ;;  %v198_v2 = vrot.slane %v197_v62, 2  ;;  %v207_v6 = vrot.slane %v206_v3, 2 }
  0xfe   : > { %v190_v4 = vadd.f32 %v189_v1, %v188_v61  ;;  %v199_v5 = vadd.f32 %v198_v2, %v197_v62  ;;  %v208_v9 = vadd.f32 %v207_v6, %v206_v3 }
 0x100   : > { %v191_v7 = vrot.slane %v190_v4, 1  ;;  %v200_v8 = vrot.slane %v199_v5, 1  ;;  %v209_v12 = vrot.slane %v208_v9, 1 }
 0x102   : > { %v192_v10 = vadd.f32 %v191_v7, %v190_v4  ;;  %v201_v11 = vadd.f32 %v200_v8, %v199_v5  ;;  %v210_v17 = vadd.f32 %v209_v12, %v208_v9 }
 0x104   : > { %v193_v13 = vmul.f32 0.33333334, %v192_v10  ;;  %v202_v14 = vmul.f32 0.33333334, %v201_v11  ;;  %v211_v18 = vmul.f32 0.33333334, %v210_v17 }
 0x106   : > { %v212_v20 = vmul.f32 %v193_v13, %v142_v16  ;;  %v213_v21 = vmul.f32 %v202_v14, %v149_v15  ;;  %v215_v26 = vmul.f32 %v211_v18, %v154_v19 }
 0x108   : > { %v214_v25 = vadd.f32 %v213_v21, %v212_v20 }
 0x10a   : > { %v216_v31 = vadd.f32 %v215_v26, %v214_v25 }
 0x10c   : > { %v217_v19 = vmul.f32 0.33333334, %v216_v31 }
 0x174   : > { %v288_v28 = vpop.xlane.xlu1 %287  ;;  %v282_v29 = vpop.xlane.xlu0 %281 }
 0x175   : > { %v289_v32 = vmul.f32 0.003921569, %v288_v28  ;;  %v283_v33 = vmul.f32 0.003921569, %v282_v29 }
 0x177   : > { %v298_v34 = vmul.f32 %v289_v32, %v718_v43  ;;  %v299_v36 = vmul.f32 %v289_v32, %v724_v46  ;;  %v296_v16 = vmul.f32 %v283_v33, %v712_v35  ;;  %v297_v15 = vmul.f32 %v283_v33, %v716_v41 }
 0x178   : > { %v294_v37 = vpop.xlane.xlu0 %293  ;;  %v315_v43 = vrot.slane %v217_v19, %v314_v38 }
 0x179   : > { %v295_v40 = vmul.f32 0.003921569, %v294_v37  ;;  %v300_v42 = vadd.f32 %v298_v34, %v296_v16  ;;  %v301_v45 = vadd.f32 %v299_v36, %v297_v15 }
 0x17a   : > { %v317_v41 = vadd.f32 %v315_v43, %v699_v0 }
 0x17b   : > { %v302_v47 = vmul.f32 %v295_v40, %v714_v39  ;;  %v303_v48 = vmul.f32 %v295_v40, %v720_v44 }
 0x17d   : > { %v304_v49 = vadd.f32 %v302_v47, %v300_v42  ;;  %v305_v46 = vadd.f32 %v303_v48, %v301_v45 }
 0x17f   : > { %v306_v50 = vmul.f32 0.33333334, %v304_v49  ;;  %v307_v35 = vmul.f32 0.33333334, %v305_v46 }
 0x181   : > { %v320_v51 = vcombine.low %v306_v50, %v307_v35 }
 0x183   : > { %v322_v52 = vadd.f32 %v320_v51, %v317_v41 }
 0x185   : > { %323 = vst [vmem:[%s132_s25] sm:$0xff] %v322_v52 }
 0x186   : > { %516 = shalt.err (!%p513_p4)
}
 0x187   : > { %s517_s5 = scalar_lea.hbm %s755_s29, 128  ;;  %s521_s14 = scalar_lea.hbm %s800_s1, 256 }
 0x188   : > { %p518_p5 = scmp.ne.s32.totalorder %s755_s29, %s517_s5  ;;  %p522_p0 = scmp.lt.u32.totalorder %s755_s29, %s800_s1 }
 0x189   : > { %p523_p1 = scmp.lt.u32.totalorder %s521_s14, %s517_s5  ;;  %p525_p6 = scmp.lt.u32.totalorder %s517_s5, %s755_s29 }
 0x18a   : > { %p519_p8 = pnand %p518_p5, %p809_p11 }
 0x18b   : > { %p524_p3 = por %p523_p1, %p522_p0 }
 0x18c   : > { %p520_p9 = pneg %p519_p8 }
 0x18d   : > { %p526_p12 = por %p525_p6, %p524_p3 }
 0x18f   : > { %p527_p13 = pnand %p526_p12, %p520_p9 }
 0x191   : > { %530 = shalt.err (!%p527_p13)
}
 0x192   : > { %427 = dma.vmem_to_hbm [thread:$0]  (%p809_p11), %s757_s26, 128, %s755_s29, %s325_s30  }
 0x193 PF: > { %s351_s21 = sand.u32 1, %s557_s6   ;;  %p810_p7 = scmp.ne.s32.totalorder %s805_s19, 0 }
 0x194   : > { %p811_p10 = scmp.ge.s32.totalorder %s569_s9, 2  ;;  %s352_s22 = scalar_lea.sflag [#allocation4], %s351_s21 }
 0x196   : > { %p434_p2 = pnand %p811_p10, %p810_p7 }
 0x198   : > { %552 = dma.done.wait (!%p434_p2), %s352_s22, 128  }
 0x199   : > { %554 = vsyncadd (!%p434_p2), %s352_s22, 4294967168  ;;  %p14_p4 = scmp.ge.s32.totalorder %s609_s12, 4   ;;  %s812_s6 = smov %s561_s7 }
 0x19a   : > { %s813_s7 = smov %s565_s8  ;;  %s814_s8 = smov %s621_s15 }
 0x19b   : > { %s815_s9 = smov %s609_s12  ;;  %16 = sbr.rel (!%p14_p4) target bundleno = 5 (0x5), region = 69 }
 0x1a2   :  { %357 = vsyncpa [#allocation3], 1 }
 0x1a3   :  { %359 = vsyncpa [#allocation3 + $0x1], 1 }
 0x1a4   :  { %360 = vsyncpa [#allocation4], 1 }
 0x1a5   :  { %362 = vsyncpa [#allocation4 + $0x1], 1 }

</bundles_post_ra>
